<compile_context>
chip_gen: v7x
topology: tpu7x:2x2x1
jax: 0.10.0
libtpu: 0.0.40
codegen_flags: <defaults>
</compile_context>

<pallas_src>
import functools

import jax
import jax.numpy as jnp
from jax.experimental import pallas as pl
from jax.experimental.pallas import tpu as pltpu


def _round_up(x, m):
    return (x + m - 1) // m * m


def _slu_kernel(x_ref, wp_ref, wn_ref, b_ref, o_ref, acc_ref):
    k = pl.program_id(2)

    @pl.when(k == 0)
    def _():
        acc_ref[...] = jnp.zeros_like(acc_ref)

    x = x_ref[...]                          # native dtype, no upcast
    zero = jnp.zeros((), dtype=x.dtype)
    xp = jnp.maximum(x, zero)               # clamp(min=0)
    xn = jnp.minimum(x, zero)               # clamp(max=0)

    # Two MXU matmuls accumulated in f32; VPU clamps are free filler under
    # the MXU-bound regime.
    acc_ref[...] += (
        jnp.dot(xp, wp_ref[...], preferred_element_type=jnp.float32)
        + jnp.dot(xn, wn_ref[...], preferred_element_type=jnp.float32)
    )

    @pl.when(k == pl.num_programs(2) - 1)
    def _():
        out = acc_ref[...] + b_ref[...].astype(jnp.float32)   # bias only at finalize
        o_ref[...] = out.astype(o_ref.dtype)


def prepare_slu_params(wp, wn, bias, *, keep_norm=False):
    """One-time weight prep (call once for static weights, not per step).

    wp, wn: (out_features, in_features) torch-layout weights.
    Returns (wp_t, wn_t, bias) in (in, out) layout; for keep_norm the
    per-output-row 1/||w|| is folded into the weights so no norm math (and no
    per-K-tile normalization bug) remains inside the tiled kernel.
    """
    if keep_norm:
        wp32 = wp.astype(jnp.float32)
        wn32 = wn.astype(jnp.float32)
        wp = (wp32 / jnp.linalg.norm(wp32, axis=1, keepdims=True)).astype(wp.dtype)
        wn = (wn32 / jnp.linalg.norm(wn32, axis=1, keepdims=True)).astype(wn.dtype)
    return wp.T, wn.T, bias


@functools.partial(jax.jit, static_argnames=("tm", "tn", "tk"))
def slu_apply(x, wp_t, wn_t, bias, *, tm=256, tn=256, tk=512):
    """x: (B, In); wp_t/wn_t: (In, Out) pre-transposed; bias: (1, Out)."""
    B, In = x.shape
    Out = wp_t.shape[1]

    # Clamp tile sizes to the (padded) problem size; keep lanes dense (x128)
    # and sublanes aligned (x8).  Defaults (256, 256, 512) stay well under the
    # scoped-VMEM defaults on v5e/v6e/v7x with double buffering:
    #   x: 256x512 f32 = 512 KiB, Wp/Wn: 512x256 = 512 KiB each, acc 256 KiB.
    tm = min(tm, _round_up(B, 8))
    tn = min(tn, _round_up(Out, 128))
    tk = min(tk, _round_up(In, 128))

    Mp = _round_up(B, tm)
    Np = _round_up(Out, tn)
    Kp = _round_up(In, tk)

    # Pad only when necessary (shapes are static, so this is free otherwise).
    xp_ = x if (Mp == B and Kp == In) else jnp.pad(x, ((0, Mp - B), (0, Kp - In)))
    wpp = wp_t if (Kp == In and Np == Out) else jnp.pad(wp_t, ((0, Kp - In), (0, Np - Out)))
    wnp = wn_t if (Kp == In and Np == Out) else jnp.pad(wn_t, ((0, Kp - In), (0, Np - Out)))
    bp = bias if Np == Out else jnp.pad(bias, ((0, 0), (0, Np - Out)))

    grid = (Mp // tm, Np // tn, Kp // tk)

    out = pl.pallas_call(
        _slu_kernel,
        out_shape=jax.ShapeDtypeStruct((Mp, Np), x.dtype),
        grid_spec=pltpu.PrefetchScalarGridSpec(
            num_scalar_prefetch=0,
            grid=grid,
            in_specs=[
                pl.BlockSpec((tm, tk), lambda i, j, k: (i, k)),   # x
                pl.BlockSpec((tk, tn), lambda i, j, k: (k, j)),   # Wp (in, out)
                pl.BlockSpec((tk, tn), lambda i, j, k: (k, j)),   # Wn (in, out)
                pl.BlockSpec((1, tn), lambda i, j, k: (0, j)),    # bias (not re-DMA'd over k)
            ],
            out_specs=pl.BlockSpec((tm, tn), lambda i, j, k: (i, j)),
            scratch_shapes=[pltpu.VMEM((tm, tn), jnp.float32)],
        ),
        compiler_params=pltpu.CompilerParams(
            dimension_semantics=("parallel", "parallel", "arbitrary"),
        ),
    )(xp_, wpp, wnp, bp)

    if Mp == B and Np == Out:
        return out
    return out[:B, :Out]


def slu_forward(x, wp, wn, bias, *, keep_norm=False):
    """Convenience wrapper: torch-layout weights (out, in), bias (1, out) or None."""
    if bias is None:
        bias = jnp.zeros((1, wp.shape[0]), dtype=x.dtype)
    wp_t, wn_t, bias = prepare_slu_params(wp, wn, bias, keep_norm=keep_norm)
    return slu_apply(x, wp_t, wn_t, bias)


def _orthogonal(key, shape, gain=1.0, dtype=jnp.float32):
    """Deterministic orthogonal init (QR of a Gaussian), like torch.nn.init.orthogonal_."""
    rows, cols = shape
    flat = jax.random.normal(key, (max(rows, cols), min(rows, cols)), dtype=jnp.float32)
    q, r = jnp.linalg.qr(flat)
    q = q * jnp.sign(jnp.diag(r))
    if rows < cols:
        q = q.T
    return (gain * q[:rows, :cols]).astype(dtype)


def _reference(x, wp, wn, bias, keep_norm):
    xp = jnp.maximum(x, 0.0)
    xn = jnp.minimum(x, 0.0)
    if keep_norm:
        np_ = jnp.linalg.norm(wp, axis=1, keepdims=True).T
        nn_ = jnp.linalg.norm(wn, axis=1, keepdims=True).T
        out = xp @ wp.T / np_ + xn @ wn.T / nn_
    else:
        out = xp @ wp.T + xn @ wn.T
    return out + bias


if __name__ == "__main__":
    key = jax.random.PRNGKey(0)
    k_x, k_p, k_n = jax.random.split(key, 3)

    B, in_features, out_features = 8, 32, 64
    gain = 1.0

    x = jax.random.normal(k_x, (B, in_features), dtype=jnp.float32)
    wp = _orthogonal(k_p, (out_features, in_features), gain=gain)   # LinearP.weight
    wn = _orthogonal(k_n, (out_features, in_features), gain=gain)   # LinearN.weight
    bias = jnp.zeros((1, out_features), dtype=jnp.float32)          # self.bias

    for keep_norm in (False, True):
        out = slu_forward(x, wp, wn, bias, keep_norm=keep_norm)
        out = jax.block_until_ready(out)
        ref = _reference(x, wp, wn, bias, keep_norm)
        assert out.shape == (B, out_features)
        assert jnp.allclose(out, ref, atol=1e-4, rtol=1e-4), \
            f"mismatch (keep_norm={keep_norm})"

    print("KERNEL_OK")
</pallas_src>

<mosaic_0001>
module attributes {stable_mosaic.version = 11 : i64} {
  func.func @_slu_kernel(%arg0: i32, %arg1: i32, %arg2: i32, %arg3: memref<8x128xf32, #tpu.memory_space<vmem>>, %arg4: memref<128x128xf32, #tpu.memory_space<vmem>>, %arg5: memref<128x128xf32, #tpu.memory_space<vmem>>, %arg6: memref<1x128xf32, #tpu.memory_space<vmem>>, %arg7: memref<8x128xf32, #tpu.memory_space<vmem>>, %arg8: memref<8x128xf32, #tpu.memory_space<vmem>>) attributes {dimension_semantics = [#tpu.dimension_semantics<parallel>, #tpu.dimension_semantics<parallel>, #tpu.dimension_semantics<arbitrary>], iteration_bounds = array<i64: 1, 1, 1>, scalar_prefetch = 0 : i64, scratch_operands = 1 : i64, tpu.core_type = #tpu.core_type<tc>, window_params = [{transform_indices = @transform_0, window_bounds = array<i64: 8, 128>}, {transform_indices = @transform_1, window_bounds = array<i64: 128, 128>}, {transform_indices = @transform_2, window_bounds = array<i64: 128, 128>}, {transform_indices = @transform_3, window_bounds = array<i64: 1, 128>}, {transform_indices = @transform_4, window_bounds = array<i64: 8, 128>}]} {
    %c0_i32 = arith.constant 0 : i32
    %0 = arith.cmpi eq, %arg2, %c0_i32 : i32
    %1 = arith.extui %0 : i1 to i32
    %c0_i32_0 = arith.constant 0 : i32
    %2 = arith.cmpi ne, %1, %c0_i32_0 : i32
    scf.if %2 {
      %cst_15 = arith.constant 0.000000e+00 : f32
      %19 = vector.broadcast %cst_15 : f32 to vector<8x128xf32>
      %c0_16 = arith.constant 0 : index
      %c0_17 = arith.constant 0 : index
      %20 = vector.load %arg8[%c0_16, %c0_17] : memref<8x128xf32, #tpu.memory_space<vmem>>, vector<8x128xf32>
      tpu.vector_store %arg8[%c0_16, %c0_17], %19 {strides = array<i32>} : memref<8x128xf32, #tpu.memory_space<vmem>>, vector<8x128xf32>,
    } else {
    }
    %c0 = arith.constant 0 : index
    %c0_1 = arith.constant 0 : index
    %3 = vector.load %arg3[%c0, %c0_1] : memref<8x128xf32, #tpu.memory_space<vmem>>, vector<8x128xf32>
    %cst = arith.constant 0.000000e+00 : f32
    %4 = vector.broadcast %cst : f32 to vector<8x128xf32>
    %5 = arith.maximumf %3, %4 : vector<8x128xf32>
    %cst_2 = arith.constant 0.000000e+00 : f32
    %6 = vector.broadcast %cst_2 : f32 to vector<8x128xf32>
    %7 = arith.minimumf %3, %6 : vector<8x128xf32>
    %c0_3 = arith.constant 0 : index
    %c0_4 = arith.constant 0 : index
    %8 = vector.load %arg8[%c0_3, %c0_4] : memref<8x128xf32, #tpu.memory_space<vmem>>, vector<8x128xf32>
    %c0_5 = arith.constant 0 : index
    %c0_6 = arith.constant 0 : index
    %9 = vector.load %arg4[%c0_5, %c0_6] : memref<128x128xf32, #tpu.memory_space<vmem>>, vector<128x128xf32>
    %cst_7 = arith.constant dense<0.000000e+00> : vector<8x128xf32>
    %10 = tpu.matmul %5, %9, %cst_7 {dimension_numbers = #tpu.dot_dimension_numbers<[1], [0], [0], [1], [0, 0, 1, 1], [], []>} : vector<8x128xf32>, vector<128x128xf32>, vector<8x128xf32> -> vector<8x128xf32>
    %c0_8 = arith.constant 0 : index
    %c0_9 = arith.constant 0 : index
    %11 = vector.load %arg5[%c0_8, %c0_9] : memref<128x128xf32, #tpu.memory_space<vmem>>, vector<128x128xf32>
    %cst_10 = arith.constant dense<0.000000e+00> : vector<8x128xf32>
    %12 = tpu.matmul %7, %11, %cst_10 {dimension_numbers = #tpu.dot_dimension_numbers<[1], [0], [0], [1], [0, 0, 1, 1], [], []>} : vector<8x128xf32>, vector<128x128xf32>, vector<8x128xf32> -> vector<8x128xf32>
    %13 = arith.addf %10, %12 : vector<8x128xf32>
    %14 = arith.addf %8, %13 : vector<8x128xf32>
    %c0_11 = arith.constant 0 : index
    %c0_12 = arith.constant 0 : index
    %15 = vector.load %arg8[%c0_11, %c0_12] : memref<8x128xf32, #tpu.memory_space<vmem>>, vector<8x128xf32>
    tpu.vector_store %arg8[%c0_11, %c0_12], %14 {strides = array<i32>} : memref<8x128xf32, #tpu.memory_space<vmem>>, vector<8x128xf32>,
    %c0_i32_13 = arith.constant 0 : i32
    %16 = arith.cmpi eq, %arg2, %c0_i32_13 : i32
    %17 = arith.extui %16 : i1 to i32
    %c0_i32_14 = arith.constant 0 : i32
    %18 = arith.cmpi ne, %17, %c0_i32_14 : i32
    scf.if %18 {
      %c0_15 = arith.constant 0 : index
      %c0_16 = arith.constant 0 : index
      %19 = vector.load %arg8[%c0_15, %c0_16] : memref<8x128xf32, #tpu.memory_space<vmem>>, vector<8x128xf32>
      %c0_17 = arith.constant 0 : index
      %c0_18 = arith.constant 0 : index
      %20 = vector.load %arg6[%c0_17, %c0_18] : memref<1x128xf32, #tpu.memory_space<vmem>>, vector<1x128xf32>
      %21 = vector.broadcast %20 : vector<1x128xf32> to vector<8x128xf32>
      %22 = arith.addf %19, %21 : vector<8x128xf32>
      %c0_19 = arith.constant 0 : index
      %c0_20 = arith.constant 0 : index
      %23 = vector.load %arg7[%c0_19, %c0_20] : memref<8x128xf32, #tpu.memory_space<vmem>>, vector<8x128xf32>
      tpu.vector_store %arg7[%c0_19, %c0_20], %22 {strides = array<i32>} : memref<8x128xf32, #tpu.memory_space<vmem>>, vector<8x128xf32>,
    } else {
    }
    return
  }
  func.func @transform_0(%arg0: i32, %arg1: i32, %arg2: i32) -> (i32, i32) {
    %c0_i32 = arith.constant 0 : i32
    return %arg0, %arg2 : i32, i32
  }
  func.func @transform_1(%arg0: i32, %arg1: i32, %arg2: i32) -> (i32, i32) {
    %c0_i32 = arith.constant 0 : i32
    return %arg2, %arg1 : i32, i32
  }
  func.func @transform_2(%arg0: i32, %arg1: i32, %arg2: i32) -> (i32, i32) {
    %c0_i32 = arith.constant 0 : i32
    return %arg2, %arg1 : i32, i32
  }
  func.func @transform_3(%arg0: i32, %arg1: i32, %arg2: i32) -> (i32, i32) {
    %c0_i32 = arith.constant 0 : i32
    %c0_i32_0 = arith.constant 0 : i32
    return %c0_i32, %arg1 : i32, i32
  }
  func.func @transform_4(%arg0: i32, %arg1: i32, %arg2: i32) -> (i32, i32) {
    %c0_i32 = arith.constant 0 : i32
    return %arg0, %arg1 : i32, i32
  }
}

</mosaic_0001>

<bundles_post_ra>
// kernel: slu_apply.1
= control target key start
LH: loop header
LB: loop body
LE: loop exit
PB: predicated region body
PF: predicated region fallthrough
CT: control target
= control target key end

     0   :  { %v409_v3 = vmov 0.0|0.0   ;;  %vm410_vm0 = vmmov 0   ;;  %v411_v11 = vmov 0.0   ;;  %s568_s0 = inlined_call_operand.vmem [shape: f32[8,128], index: 0, kind: input, shape index: {}]   ;;  %s569_s1 = inlined_call_operand.vmem [shape: f32[128,128], index: 1, kind: input, shape index: {}]   ;;  %s570_s2 = inlined_call_operand.vmem [shape: f32[128,128], index: 2, kind: input, shape index: {}]   ;;  %s571_s3 = inlined_call_operand.vmem [shape: f32[1,128], index: 3, kind: input, shape index: {}]   ;;  %s572_s4 = inlined_call_operand.hbm [shape: f32[8,128], index: 4, kind: output, shape index: {}]  }
   0x1   :  { %v43_v0 = vld [vmem:[%s570_s2] sm:$0xff]  ;;  %v44_v1 = vld [vmem:[%s570_s2 + $0x8] sm:$0xff]  ;;  %333 = vmatprep.subr.bf16.mxu0 %v409_v3  ;;  %357 = vmatprep.subr.bf16.mxu1 %v409_v3  ;;  %v45_v6 = vld [vmem:[%s570_s2 + $0x10] sm:$0xff] }
   0x2   :  { %v27_v2 = vld [vmem:[%s569_s1] sm:$0xff]  ;;  %v334_v4 = vpack.c.bf16 %v44_v1, %v43_v0  ;;  %v28_v5 = vld [vmem:[%s569_s1 + $0x8] sm:$0xff]  ;;  %v46_v7 = vld [vmem:[%s570_s2 + $0x18] sm:$0xff]  ;;  %295 = vmatprep.mubr.msk.f32.mxu0 %vm410_vm0, %v411_v11  ;;  %330 = vmatprep.mubr.msk.f32.mxu1 %vm410_vm0, %v411_v11 }
   0x3   :  { %v358_v8 = vpack.c.bf16 %v28_v5, %v27_v2  ;;  %v29_v9 = vld [vmem:[%s569_s1 + $0x10] sm:$0xff]  ;;  %v30_v10 = vld [vmem:[%s569_s1 + $0x18] sm:$0xff]  ;;  %v337_v12 = vpack.c.bf16 %v46_v7, %v45_v6  ;;  %v47_v14 = vld [vmem:[%s570_s2 + $0x20] sm:$0xff] }
   0x4   :  { %335 = vmatpush3.bf16.msra.mxu0 %v334_v4  ;;  %v361_v13 = vpack.c.bf16 %v30_v10, %v29_v9  ;;  %v48_v15 = vld [vmem:[%s570_s2 + $0x28] sm:$0xff]  ;;  %v31_v16 = vld [vmem:[%s569_s1 + $0x20] sm:$0xff]  ;;  %v49_v20 = vld [vmem:[%s570_s2 + $0x30] sm:$0xff] }
   0x5   :  { %359 = vmatpush3.bf16.msra.mxu1 %v358_v8  ;;  %336 = vmatprep.subr.bf16.mxu0 %v409_v3  ;;  %v32_v17 = vld [vmem:[%s569_s1 + $0x28] sm:$0xff]  ;;  %v340_v18 = vpack.c.bf16 %v48_v15, %v47_v14  ;;  %v50_v21 = vld [vmem:[%s570_s2 + $0x38] sm:$0xff]  ;;  %v33_v22 = vld [vmem:[%s569_s1 + $0x30] sm:$0xff] }
   0x6   :  { %360 = vmatprep.subr.bf16.mxu1 %v409_v3  ;;  %v364_v19 = vpack.c.bf16 %v32_v17, %v31_v16  ;;  %v34_v23 = vld [vmem:[%s569_s1 + $0x38] sm:$0xff]  ;;  %v343_v24 = vpack.c.bf16 %v50_v21, %v49_v20 }
   0x8   :  { %338 = vmatpush3.bf16.msra.mxu0 %v337_v12 }
   0x9   :  { %362 = vmatpush3.bf16.msra.mxu1 %v361_v13  ;;  %339 = vmatprep.subr.bf16.mxu0 %v409_v3 }
   0xa   :  { %363 = vmatprep.subr.bf16.mxu1 %v409_v3 }
   0xc   :  { %341 = vmatpush3.bf16.msra.mxu0 %v340_v18 }
   0xd   :  { %9 = vsyncpa [#allocation4], 0  ;;  %365 = vmatpush3.bf16.msra.mxu1 %v364_v19  ;;  %342 = vmatprep.subr.bf16.mxu0 %v409_v3  ;;  %v367_v25 = vpack.c.bf16 %v34_v23, %v33_v22  ;;  %v51_v26 = vld [vmem:[%s570_s2 + $0x40] sm:$0xff]  ;;  %v52_v27 = vld [vmem:[%s570_s2 + $0x48] sm:$0xff] }
   0xe   :  { %366 = vmatprep.subr.bf16.mxu1 %v409_v3  ;;  %v35_v28 = vld [vmem:[%s569_s1 + $0x40] sm:$0xff]  ;;  %v36_v29 = vld [vmem:[%s569_s1 + $0x48] sm:$0xff]  ;;  %v346_v30 = vpack.c.bf16 %v52_v27, %v51_v26  ;;  %v53_v32 = vld [vmem:[%s570_s2 + $0x50] sm:$0xff] }
   0xf   :  { %v370_v31 = vpack.c.bf16 %v36_v29, %v35_v28  ;;  %v54_v33 = vld [vmem:[%s570_s2 + $0x58] sm:$0xff]  ;;  %v37_v34 = vld [vmem:[%s569_s1 + $0x50] sm:$0xff]  ;;  %v55_v38 = vld [vmem:[%s570_s2 + $0x60] sm:$0xff] }
  0x10   :  { %344 = vmatpush3.bf16.msra.mxu0 %v343_v24  ;;  %v38_v35 = vld [vmem:[%s569_s1 + $0x58] sm:$0xff]  ;;  %v349_v36 = vpack.c.bf16 %v54_v33, %v53_v32  ;;  %v56_v39 = vld [vmem:[%s570_s2 + $0x68] sm:$0xff]  ;;  %v39_v40 = vld [vmem:[%s569_s1 + $0x60] sm:$0xff] }
  0x11   :  { %368 = vmatpush3.bf16.msra.mxu1 %v367_v25  ;;  %345 = vmatprep.subr.bf16.mxu0 %v409_v3  ;;  %v373_v37 = vpack.c.bf16 %v38_v35, %v37_v34  ;;  %v40_v41 = vld [vmem:[%s569_s1 + $0x68] sm:$0xff]  ;;  %v352_v42 = vpack.c.bf16 %v56_v39, %v55_v38  ;;  %v57_v44 = vld [vmem:[%s570_s2 + $0x70] sm:$0xff]  ;;  %v58_v45 = vld [vmem:[%s570_s2 + $0x78] sm:$0xff] }
  0x12   :  { %369 = vmatprep.subr.bf16.mxu1 %v409_v3  ;;  %v376_v43 = vpack.c.bf16 %v40_v41, %v39_v40  ;;  %v41_v46 = vld [vmem:[%s569_s1 + $0x70] sm:$0xff]  ;;  %v42_v47 = vld [vmem:[%s569_s1 + $0x78] sm:$0xff]  ;;  %v355_v48 = vpack.c.bf16 %v58_v45, %v57_v44  ;;  %v23_v49 = vld [vmem:[%s568_s0] sm:$0xff]  ;;  %s412_s0 = smov [#allocation3]  }
  0x13   :  { %v379_v50 = vpack.c.bf16 %v42_v47, %v41_v46  ;;  %v25_v51 = vmin.f32 %v23_v49, 0.0  ;;  %v24_v52 = vmax.f32 %v23_v49, 0.0  ;;  %v228_v56 = vld [vmem:[%s571_s3] ss:$0 sm:$0xff]  ;;  %s220_s29 = sshll.u32 %s412_s0, 4  ;;  %s221_s29 = int_to_ptr.vmem [resolvable:$true] %s220_s29 }
  0x14   :  { %347 = vmatpush3.bf16.msra.mxu0 %v346_v30  ;;  %s385_s30 = scalar_lea.vmem %s221_s29, 128  ;;  %p390_p1 = scmp.lt.s32.totalorder %s221_s29, %s221_s29 }
  0x15   :  { %371 = vmatpush3.bf16.msra.mxu1 %v370_v31  ;;  %348 = vmatprep.subr.bf16.mxu0 %v409_v3  ;;  %p386_p0 = scmp.ne.s32.totalorder %s221_s29, %s385_s30  ;;  %p391_p2 = scmp.lt.s32.totalorder %s385_s30, %s385_s30 }
  0x16   :  { %372 = vmatprep.subr.bf16.mxu1 %v409_v3 }
  0x17   :  { %p392_p3 = por %p391_p2, %p390_p1 }
  0x18   :  { %350 = vmatpush3.bf16.msra.mxu0 %v349_v36 }
  0x19   :  { %374 = vmatpush3.bf16.msra.mxu1 %v373_v37  ;;  %351 = vmatprep.subr.bf16.mxu0 %v409_v3  ;;  %p393_p4 = pnand %p392_p3, %p386_p0 }
  0x1a   :  { %375 = vmatprep.subr.bf16.mxu1 %v409_v3 }
  0x1c   :  { %353 = vmatpush3.bf16.msra.mxu0 %v352_v42 }
  0x1d   :  { %377 = vmatpush3.bf16.msra.mxu1 %v376_v43  ;;  %354 = vmatprep.subr.bf16.mxu0 %v409_v3 }
  0x1e   :  { %378 = vmatprep.subr.bf16.mxu1 %v409_v3 }
  0x20   :  { %356 = vmatpush3.bf16.msra.mxu0 %v355_v48 }
  0x21   :  { %380 = vmatpush3.bf16.msra.mxu1 %v379_v50 }
  0x23   :  { %296 = vmatmul.mubr.f32.vlgmr.msra.gmra.mrb[0].mxu0 %v25_v51 }
  0x24   :  { %331 = vmatmul.mubr.f32.vlgmr.msra.gmra.mrb[0].mxu1 %v24_v52 }
  0xf6   :  { %v125_v53 = vpop.f32.mrb[0].mxu0 }
  0xf7   :  { %v195_v54 = vpop.f32.mrb[0].mxu1  ;;  %v297_v55 = vpop.f32.mrb[1].mxu0 }
  0xf8   :  { %v196_v57 = vadd.f32 %v195_v54, %v125_v53  ;;  %v332_v58 = vpop.f32.mrb[1].mxu1 }
  0xfa   :  { %v212_v59 = vadd.f32 %v228_v56, %v196_v57 }
  0xfc   :  { %213 = vst [vmem:[#allocation3] sm:$0xff] %v212_v59 }
  0xfd   :  { %396 = shalt.err (!%p393_p4)
}
  0xfe   :  { %s397_s7 = scalar_lea.hbm %s572_s4, 128 }
  0xff   :  { %p398_p5 = scmp.ne.s32.totalorder %s572_s4, %s397_s7  ;;  %p401_p6 = scmp.lt.u32.totalorder %s397_s7, %s572_s4 }
 0x101   :  { %p403_p7 = pnand %p401_p6, %p398_p5 }
 0x103   :  { %406 = shalt.err (!%p403_p7)
}
 0x104   :  { %223 = dma.vmem_to_hbm [thread:$0]  %s221_s29, 128, %s572_s4, [#allocation4]  }
 0x105   :  { %407 = dma.done.wait [#allocation4], 128  }
 0x106   :  { %408 = vsyncadd [#allocation4], 4294967168 }
 0x107   :  { %227 = vsyncpa [#allocation4], 1 }

</bundles_post_ra>
